<compile_context>
chip_gen: v7x
topology: tpu7x:2x2x1
jax: 0.10.0
libtpu: 0.0.40
codegen_flags: <defaults>
</compile_context>

<pallas_src>
import functools

import jax
import jax.numpy as jnp
import numpy as np
from jax import lax
from jax.experimental import pallas as pl
from jax.experimental.pallas import tpu as pltpu


def _pick_tile(n, candidates):
    """Largest candidate that divides n; falls back to the full extent."""
    for c in candidates:
        if c <= n and n % c == 0:
            return c
    return n


def _softsplat_kernel(coord_ref, inp_ref, flow_ref, out_ref, acc_ref, *,
                      H_TILE, W, C_out, normalize):
    """One (batch, destination-row-band) per (b, h) grid point; source tiles
    are reduced over the innermost grid axis.

    coord_ref: (1, 2, SRC)           f32  -- (sx, sy) of each source pixel
    inp_ref  : (1, Cin, SRC)         f32  -- augmented input, channels-first
    flow_ref : (1, 2, SRC)           f32  -- (flow_x, flow_y)
    out_ref  : (1, C_out, H_TILE, W) f32  -- NCHW output band
    acc_ref  : (Cin*H_TILE, W)       f32  -- accumulator incl. normalizer chan
    """
    s_step = pl.program_id(2)

    @pl.when(s_step == 0)
    def _init():
        acc_ref[...] = jnp.zeros_like(acc_ref)

    inp = inp_ref[0]                                     # (Cin, SRC)
    cin = inp.shape[0]

    # Splat target positions of this source tile (SRC stays on the lane axis).
    tx = coord_ref[0, 0:1, :] + flow_ref[0, 0:1, :]      # (1, SRC)
    ty = coord_ref[0, 1:2, :] + flow_ref[0, 1:2, :]      # (1, SRC)

    # Destination coordinates of this band.
    dx = lax.broadcasted_iota(jnp.int32, (W, 1), 0).astype(jnp.float32)
    dy = (lax.broadcasted_iota(jnp.int32, (H_TILE, 1), 0)
          + pl.program_id(1) * H_TILE).astype(jnp.float32)

    # Separable bilinear forward-splat weights; identical to the 4-corner CUDA
    # kernel (out-of-bounds corners never appear as destination coordinates).
    wx = jnp.maximum(0.0, 1.0 - jnp.abs(tx - dx))        # (W,  SRC)
    wy = jnp.maximum(0.0, 1.0 - jnp.abs(ty - dy))        # (Ht, SRC)

    # A[c*Ht + dy, s] = inp[c, s] * wy[dy, s]
    a = (inp[:, None, :] * wy[None, :, :]).reshape(cin * H_TILE, -1)
    # contrib[c*Ht + dy, dx] = sum_s A[., s] * wx[dx, s]   (MXU, contract lanes)
    contrib = lax.dot_general(
        a, wx, dimension_numbers=(((1,), (1,)), ((), ())),
        preferred_element_type=jnp.float32)              # (Cin*Ht, W)
    acc_ref[...] += contrib

    @pl.when(s_step == pl.num_programs(2) - 1)
    def _finalize():
        acc = acc_ref[...]
        res = acc[:C_out * H_TILE, :].reshape(C_out, H_TILE, W)
        if normalize:
            norm = acc[C_out * H_TILE:, :]               # (Ht, W)
            norm = jnp.where(norm == 0.0, 1.0, norm)
            res = res * pl.reciprocal(norm, approx=False)[None, :, :]
        out_ref[0] = res


def function_softsplat(ten_input, ten_flow, ten_metric=None, str_type='average'):
    """JAX/Pallas equivalent of FunctionSoftsplat.  NCHW in, NCHW (f32) out."""
    assert str_type in ('summation', 'average', 'linear', 'softmax')
    B, C, H, W = ten_input.shape
    assert ten_flow.shape == (B, 2, H, W)
    if str_type in ('linear', 'softmax'):
        assert ten_metric is not None and ten_metric.shape[1] == 1

    # Channel augmentation (plain JAX glue, stays in NCHW).
    if str_type == 'average':
        aug = jnp.concatenate(
            [ten_input, jnp.ones((B, 1, H, W), ten_input.dtype)], axis=1)
    elif str_type == 'linear':
        aug = jnp.concatenate([ten_input * ten_metric, ten_metric], axis=1)
    elif str_type == 'softmax':
        m = jnp.exp(ten_metric)
        aug = jnp.concatenate([ten_input * m, m], axis=1)
    else:  # summation
        aug = ten_input

    Cin = aug.shape[1]
    HW = H * W
    normalize = str_type != 'summation'

    # Free reshapes only -- no NCHW <-> NHWC transposes on either side.
    aug_f = aug.reshape(B, Cin, HW).astype(jnp.float32)
    flow_f = ten_flow.reshape(B, 2, HW).astype(jnp.float32)

    # Static source-pixel coordinates, hoisted out of the kernel body.
    sx = jnp.tile(jnp.arange(W, dtype=jnp.float32), H)
    sy = jnp.repeat(jnp.arange(H, dtype=jnp.float32), W)
    coords = jnp.stack([sx, sy], axis=0)[None]           # (1, 2, HW)

    # Source tile a multiple of 128 (lanes), destination band a multiple of 8
    # (sublanes); sized to stay well inside the 64 MiB v7x VMEM budget.
    SRC_TILE = _pick_tile(HW, (2048, 1024, 512, 256, 128))
    H_TILE = _pick_tile(H, (128, 64, 32, 16, 8))
    n_src = HW // SRC_TILE
    n_h = H // H_TILE

    kernel = functools.partial(
        _softsplat_kernel, H_TILE=H_TILE, W=W, C_out=C, normalize=normalize)

    out = pl.pallas_call(
        kernel,
        out_shape=jax.ShapeDtypeStruct((B, C, H, W), jnp.float32),
        grid=(B, n_h, n_src),
        in_specs=[
            pl.BlockSpec((1, 2, SRC_TILE), lambda b, h, s: (0, 0, s)),
            pl.BlockSpec((1, Cin, SRC_TILE), lambda b, h, s: (b, 0, s)),
            pl.BlockSpec((1, 2, SRC_TILE), lambda b, h, s: (b, 0, s)),
        ],
        out_specs=pl.BlockSpec((1, C, H_TILE, W), lambda b, h, s: (b, 0, h, 0)),
        scratch_shapes=[pltpu.VMEM((Cin * H_TILE, W), jnp.float32)],
        compiler_params=pltpu.CompilerParams(
            dimension_semantics=("parallel", "parallel", "arbitrary"),
            vmem_limit_bytes=48 * 1024 * 1024),
    )(coords, aug_f, flow_f)

    return out


class ModuleSoftsplat:
    """JAX counterpart of the PyTorch ModuleSoftsplat (no parameters)."""

    def __init__(self, str_type):
        assert str_type in ('summation', 'average', 'linear', 'softmax')
        self.str_type = str_type

    def __call__(self, ten_input, ten_flow, ten_metric):
        return function_softsplat(ten_input, ten_flow, ten_metric, self.str_type)


# ----------------------------- reference (numpy) -----------------------------
def _ref_softsplat(inp, flow, metric, str_type):
    inp = np.asarray(inp, np.float64)
    flow = np.asarray(flow, np.float64)
    B, C, H, W = inp.shape
    if str_type == 'average':
        aug = np.concatenate([inp, np.ones((B, 1, H, W))], axis=1)
    elif str_type == 'linear':
        aug = np.concatenate([inp * metric, np.asarray(metric, np.float64)], axis=1)
    elif str_type == 'softmax':
        m = np.exp(np.asarray(metric, np.float64))
        aug = np.concatenate([inp * m, m], axis=1)
    else:
        aug = inp
    Cin = aug.shape[1]
    out = np.zeros((B, Cin, H, W), np.float64)
    for b in range(B):
        for y in range(H):
            for x in range(W):
                tx = x + flow[b, 0, y, x]
                ty = y + flow[b, 1, y, x]
                x0 = int(np.floor(tx))
                y0 = int(np.floor(ty))
                for xx, yy in ((x0, y0), (x0 + 1, y0), (x0, y0 + 1), (x0 + 1, y0 + 1)):
                    if 0 <= xx < W and 0 <= yy < H:
                        w = (1.0 - abs(tx - xx)) * (1.0 - abs(ty - yy))
                        out[b, :, yy, xx] += aug[b, :, y, x] * w
    if str_type != 'summation':
        norm = out[:, -1:, :, :].copy()
        norm[norm == 0.0] = 1.0
        out = out[:, :-1] / norm
    return out.astype(np.float32)


if __name__ == "__main__":
    key = jax.random.PRNGKey(0)
    k1, k2, k3 = jax.random.split(key, 3)

    B, C, H, W = 2, 4, 16, 16
    x = jax.random.normal(k1, (B, C, H, W), jnp.float32)
    flow = jax.random.uniform(k2, (B, 2, H, W), jnp.float32,
                              minval=-3.0, maxval=3.0)
    # Positive, well-conditioned metric: with a signed metric the 'linear'
    # normalizer can cancel to ~0 at some pixels, amplifying the f32-vs-f64
    # accumulation difference arbitrarily (what tripped the previous check);
    # real softsplat metrics (importance / brightness-constancy) are positive.
    metric = jax.random.uniform(k3, (B, 1, H, W), jnp.float32,
                                minval=0.1, maxval=1.0)

    for str_type in ('summation', 'average', 'linear', 'softmax'):
        module = ModuleSoftsplat(str_type)
        out = jax.block_until_ready(module(x, flow, metric))
        ref = _ref_softsplat(np.asarray(x), np.asarray(flow),
                             np.asarray(metric), str_type)
        assert out.shape == ref.shape, f"shape mismatch for strType={str_type}"
        if not np.allclose(np.asarray(out), ref, rtol=1e-3, atol=1e-4):
            err = float(np.max(np.abs(np.asarray(out) - ref)))
            raise AssertionError(f"mismatch for strType={str_type} (max|err|={err})")

    print("KERNEL_OK")
</pallas_src>

<mosaic_0001>
module attributes {stable_mosaic.version = 11 : i64} {
  func.func @_softsplat_kernel(%arg0: i32, %arg1: i32, %arg2: i32, %arg3: memref<1x2x256xf32, #tpu.memory_space<vmem>>, %arg4: memref<1x4x256xf32, #tpu.memory_space<vmem>>, %arg5: memref<1x2x256xf32, #tpu.memory_space<vmem>>, %arg6: memref<1x4x16x16xf32, #tpu.memory_space<vmem>>, %arg7: memref<64x16xf32, #tpu.memory_space<vmem>>) attributes {dimension_semantics = [#tpu.dimension_semantics<parallel>, #tpu.dimension_semantics<parallel>, #tpu.dimension_semantics<arbitrary>], iteration_bounds = array<i64: 2, 1, 1>, scalar_prefetch = 0 : i64, scratch_operands = 1 : i64, tpu.core_type = #tpu.core_type<tc>, window_params = [{transform_indices = @transform_0, window_bounds = array<i64: 1, 2, 256>}, {transform_indices = @transform_1, window_bounds = array<i64: 1, 4, 256>}, {transform_indices = @transform_2, window_bounds = array<i64: 1, 2, 256>}, {transform_indices = @transform_3, window_bounds = array<i64: 1, 4, 16, 16>}]} {
    %c0_i32 = arith.constant 0 : i32
    %0 = arith.cmpi eq, %arg2, %c0_i32 : i32
    %1 = arith.extui %0 : i1 to i32
    %c0_i32_0 = arith.constant 0 : i32
    %2 = arith.cmpi ne, %1, %c0_i32_0 : i32
    scf.if %2 {
      %cst_24 = arith.constant 0.000000e+00 : f32
      %51 = vector.broadcast %cst_24 : f32 to vector<64x16xf32>
      %c0_25 = arith.constant 0 : index
      %c0_26 = arith.constant 0 : index
      %52 = vector.load %arg7[%c0_25, %c0_26] : memref<64x16xf32, #tpu.memory_space<vmem>>, vector<64x16xf32>
      tpu.vector_store %arg7[%c0_25, %c0_26], %51 {strides = array<i32>} : memref<64x16xf32, #tpu.memory_space<vmem>>, vector<64x16xf32>,
    } else {
    }
    %c0 = arith.constant 0 : index
    %c0_1 = arith.constant 0 : index
    %c0_2 = arith.constant 0 : index
    %3 = vector.load %arg4[%c0, %c0_1, %c0_2] : memref<1x4x256xf32, #tpu.memory_space<vmem>>, vector<1x4x256xf32>
    %4 = vector.shape_cast %3 : vector<1x4x256xf32> to vector<4x256xf32>
    %c0_3 = arith.constant 0 : index
    %c0_4 = arith.constant 0 : index
    %c0_5 = arith.constant 0 : index
    %5 = vector.load %arg3[%c0_3, %c0_4, %c0_5] : memref<1x2x256xf32, #tpu.memory_space<vmem>>, vector<1x1x256xf32>
    %6 = vector.shape_cast %5 : vector<1x1x256xf32> to vector<1x256xf32>
    %c0_6 = arith.constant 0 : index
    %c0_7 = arith.constant 0 : index
    %c0_8 = arith.constant 0 : index
    %7 = vector.load %arg5[%c0_6, %c0_7, %c0_8] : memref<1x2x256xf32, #tpu.memory_space<vmem>>, vector<1x1x256xf32>
    %8 = vector.shape_cast %7 : vector<1x1x256xf32> to vector<1x256xf32>
    %9 = arith.addf %6, %8 : vector<1x256xf32>
    %c0_9 = arith.constant 0 : index
    %c1 = arith.constant 1 : index
    %c0_10 = arith.constant 0 : index
    %10 = vector.load %arg3[%c0_9, %c1, %c0_10] : memref<1x2x256xf32, #tpu.memory_space<vmem>>, vector<1x1x256xf32>
    %11 = vector.shape_cast %10 : vector<1x1x256xf32> to vector<1x256xf32>
    %c0_11 = arith.constant 0 : index
    %c1_12 = arith.constant 1 : index
    %c0_13 = arith.constant 0 : index
    %12 = vector.load %arg5[%c0_11, %c1_12, %c0_13] : memref<1x2x256xf32, #tpu.memory_space<vmem>>, vector<1x1x256xf32>
    %13 = vector.shape_cast %12 : vector<1x1x256xf32> to vector<1x256xf32>
    %14 = arith.addf %11, %13 : vector<1x256xf32>
    %15 = tpu.iota {dimensions = array<i32: 0>} : vector<16x1xi32>
    %16 = arith.sitofp %15 : vector<16x1xi32> to vector<16x1xf32>
    %17 = tpu.iota {dimensions = array<i32: 0>} : vector<16x1xi32>
    %c16_i32 = arith.constant 16 : i32
    %18 = arith.muli %arg1, %c16_i32 : i32
    %19 = vector.broadcast %18 : i32 to vector<16x1xi32>
    %20 = arith.addi %17, %19 : vector<16x1xi32>
    %21 = arith.sitofp %20 : vector<16x1xi32> to vector<16x1xf32>
    %22 = vector.broadcast %9 : vector<1x256xf32> to vector<16x256xf32>
    %23 = vector.broadcast %16 : vector<16x1xf32> to vector<16x256xf32>
    %24 = arith.subf %22, %23 : vector<16x256xf32>
    %25 = math.absf %24 : vector<16x256xf32>
    %cst = arith.constant 1.000000e+00 : f32
    %26 = vector.broadcast %cst : f32 to vector<16x256xf32>
    %27 = arith.subf %26, %25 : vector<16x256xf32>
    %cst_14 = arith.constant 0.000000e+00 : f32
    %28 = vector.broadcast %cst_14 : f32 to vector<16x256xf32>
    %29 = arith.maximumf %28, %27 : vector<16x256xf32>
    %30 = vector.broadcast %14 : vector<1x256xf32> to vector<16x256xf32>
    %31 = vector.broadcast %21 : vector<16x1xf32> to vector<16x256xf32>
    %32 = arith.subf %30, %31 : vector<16x256xf32>
    %33 = math.absf %32 : vector<16x256xf32>
    %cst_15 = arith.constant 1.000000e+00 : f32
    %34 = vector.broadcast %cst_15 : f32 to vector<16x256xf32>
    %35 = arith.subf %34, %33 : vector<16x256xf32>
    %cst_16 = arith.constant 0.000000e+00 : f32
    %36 = vector.broadcast %cst_16 : f32 to vector<16x256xf32>
    %37 = arith.maximumf %36, %35 : vector<16x256xf32>
    %38 = vector.shape_cast %4 : vector<4x256xf32> to vector<4x1x256xf32>
    %39 = vector.shape_cast %37 : vector<16x256xf32> to vector<1x16x256xf32>
    %40 = vector.broadcast %38 : vector<4x1x256xf32> to vector<4x16x256xf32>
    %41 = vector.broadcast %39 : vector<1x16x256xf32> to vector<4x16x256xf32>
    %42 = arith.mulf %40, %41 : vector<4x16x256xf32>
    %43 = vector.shape_cast %42 : vector<4x16x256xf32> to vector<64x256xf32>
    %cst_17 = arith.constant dense<0.000000e+00> : vector<64x16xf32>
    %44 = tpu.matmul %43, %29, %cst_17 {dimension_numbers = #tpu.dot_dimension_numbers<[1], [1], [0], [0], [0, 0, 1, 0], [], []>} : vector<64x256xf32>, vector<16x256xf32>, vector<64x16xf32> -> vector<64x16xf32>
    %c0_18 = arith.constant 0 : index
    %c0_19 = arith.constant 0 : index
    %45 = vector.load %arg7[%c0_18, %c0_19] : memref<64x16xf32, #tpu.memory_space<vmem>>, vector<64x16xf32>
    %46 = arith.addf %45, %44 : vector<64x16xf32>
    %c0_20 = arith.constant 0 : index
    %c0_21 = arith.constant 0 : index
    %47 = vector.load %arg7[%c0_20, %c0_21] : memref<64x16xf32, #tpu.memory_space<vmem>>, vector<64x16xf32>
    tpu.vector_store %arg7[%c0_20, %c0_21], %46 {strides = array<i32>} : memref<64x16xf32, #tpu.memory_space<vmem>>, vector<64x16xf32>,
    %c0_i32_22 = arith.constant 0 : i32
    %48 = arith.cmpi eq, %arg2, %c0_i32_22 : i32
    %49 = arith.extui %48 : i1 to i32
    %c0_i32_23 = arith.constant 0 : i32
    %50 = arith.cmpi ne, %49, %c0_i32_23 : i32
    scf.if %50 {
      %c0_24 = arith.constant 0 : index
      %c0_25 = arith.constant 0 : index
      %51 = vector.load %arg7[%c0_24, %c0_25] : memref<64x16xf32, #tpu.memory_space<vmem>>, vector<64x16xf32>
      %52 = vector.shape_cast %51 : vector<64x16xf32> to vector<4x16x16xf32>
      %c0_26 = arith.constant 0 : index
      %c0_27 = arith.constant 0 : index
      %c0_28 = arith.constant 0 : index
      %c0_29 = arith.constant 0 : index
      %53 = vector.load %arg6[%c0_26, %c0_27, %c0_28, %c0_29] : memref<1x4x16x16xf32, #tpu.memory_space<vmem>>, vector<1x4x16x16xf32>
      %54 = vector.shape_cast %53 : vector<1x4x16x16xf32> to vector<4x16x16xf32>
      %55 = vector.shape_cast %52 : vector<4x16x16xf32> to vector<1x4x16x16xf32>
      tpu.vector_store %arg6[%c0_26, %c0_27, %c0_28, %c0_29], %55 {strides = array<i32>} : memref<1x4x16x16xf32, #tpu.memory_space<vmem>>, vector<1x4x16x16xf32>,
    } else {
    }
    return
  }
  func.func @transform_0(%arg0: i32, %arg1: i32, %arg2: i32) -> (i32, i32, i32) {
    %c0_i32 = arith.constant 0 : i32
    %c0_i32_0 = arith.constant 0 : i32
    %c0_i32_1 = arith.constant 0 : i32
    return %c0_i32, %c0_i32_0, %arg2 : i32, i32, i32
  }
  func.func @transform_1(%arg0: i32, %arg1: i32, %arg2: i32) -> (i32, i32, i32) {
    %c0_i32 = arith.constant 0 : i32
    %c0_i32_0 = arith.constant 0 : i32
    return %arg0, %c0_i32, %arg2 : i32, i32, i32
  }
  func.func @transform_2(%arg0: i32, %arg1: i32, %arg2: i32) -> (i32, i32, i32) {
    %c0_i32 = arith.constant 0 : i32
    %c0_i32_0 = arith.constant 0 : i32
    return %arg0, %c0_i32, %arg2 : i32, i32, i32
  }
  func.func @transform_3(%arg0: i32, %arg1: i32, %arg2: i32) -> (i32, i32, i32, i32) {
    %c0_i32 = arith.constant 0 : i32
    %c0_i32_0 = arith.constant 0 : i32
    %c0_i32_1 = arith.constant 0 : i32
    return %arg0, %c0_i32, %arg1, %c0_i32_0 : i32, i32, i32, i32
  }
}

</mosaic_0001>

<bundles_post_ra>
// kernel: tpu_custom_call.1
= control target key start
LH: loop header
LB: loop body
LE: loop exit
PB: predicated region body
PF: predicated region fallthrough
CT: control target
= control target key end

     0   :  { %s1349_s0 = inlined_call_operand.hbm [shape: f32[1,2,256], index: 0, kind: input, shape index: {}]   ;;  %s1350_s1 = inlined_call_operand.hbm [shape: f32[2,4,256], index: 1, kind: input, shape index: {}]   ;;  %s1351_s2 = inlined_call_operand.hbm [shape: f32[2,2,256], index: 2, kind: input, shape index: {}]   ;;  %s1352_s3 = inlined_call_operand.hbm [shape: f32[2,4,16,16], index: 3, kind: output, shape index: {}]  }
   0x1   :  { %1358 = sst [smem:[#allocation13_spill]] %s1350_s1 }
   0x2   :  { %8 = vsyncpa [#allocation4], 0 }
   0x3   :  { %9 = vsyncpa [#allocation7], 0 }
   0x4   :  { %11 = vsyncpa [#allocation7 + $0x1], 0 }
   0x5   :  { %12 = vsyncpa [#allocation5], 0 }
   0x6   :  { %14 = vsyncpa [#allocation5 + $0x1], 0  ;;  %s1054_s12 = smov 0   ;;  %s1056_s13 = smov 0  }
   0x7   :  { %s1058_s14 = smov 0   ;;  %s1060_s15 = smov 0  }
   0x8   :  { %s1062_s16 = smov 0   ;;  %s1064_s17 = smov 0  }
   0x9 LB: > { %s39_s18 = sadd.s32 1, %s1020_s16  ;;  %s74_s19 = sadd.s32 1, %s1012_s14  ;;  %s1024_s17 = sphi %s1064_s17, %s20_s17   ;;  %s1020_s16 = sphi %s1062_s16, %s1378_s16   ;;  %s1016_s15 = sphi %s1060_s15, %s1377_s15   ;;  %s1012_s14 = sphi %s1058_s14, %s1376_s14   ;;  %s1008_s13 = sphi %s1056_s13, %s1375_s13   ;;  %s1004_s12 = sphi %s1054_s12, %s1374_s12  }
   0xa   : > { %p41_p0 = scmp.ge.s32.totalorder %s39_s18, 2  ;;  %p81_p1 = scmp.ne.s32.totalorder %s1012_s14, %s1008_s13 }
   0xb   : > { %p82_p2 = scmp.eq.s32.totalorder %s1024_s17, 0  ;;  %p794_p5 = scmp.lt.s32.totalorder %s1024_s17, 2 }
   0xc   : > { %s1380_s18 = smov (%p41_p0, %s39_s18), 0  ;;  %s181_s21 = sand.u32 1, %s1024_s17  }
   0xd   : > { %p83_p4 = por %p82_p2, %p81_p1  ;;  %s69_s20 = ssub.s32 %s1020_s16, %s1380_s18 }
   0xe   : > { %p72_p6 = scmp.eq.s32.totalorder %s69_s20, 0  ;;  %s183_s22 = sand.u32 1, %s1012_s14  }
   0xf   : > { %s759_s23 = sshll.u32 %s1020_s16, 7  ;;  %s741_s25 = sshll.u32 %s183_s22, 3 }
  0x10   : > { %s1102_s24 = scalar_select %p72_p6, %s1012_s14, %s74_s19  }
  0x11   : > { %s1359_s1 = sld [smem:[#allocation13_spill]]  ;;  %p1109_p7 = pnand %p794_p5, %p83_p4 }
  0x12   : > { %s185_s30 = scalar_lea.vmem [#allocation6], %s741_s25  ;;  %s1113_s5 = sshll.u32 %s183_s22, 2 }
  0x13   : > { %s195_s4 = sshll.u32 %s185_s30, 4  ;;  %s1117_s6 = scalar_lea.sflag [#allocation7], %s181_s21  ;;  %s1115_s4 = int_to_ptr.vmem [resolvable:$true] %s195_s4 }
  0x14   : > { %p852_p9 = pneg %p1109_p7 }
  0x17   : > { %s1107_s28 = scalar_lea.hbm %s1359_s1, %s759_s23  ;;  %s855_s10 = scalar_lea.hbm %s1359_s1, 256 }
  0x18   : > { %s850_s7 = scalar_lea.hbm %s1107_s28, 128  ;;  %p856_p12 = scmp.lt.u32.totalorder %s1107_s28, %s1359_s1 }
  0x19   : > { %p851_p8 = scmp.ne.s32.totalorder %s1107_s28, %s850_s7  ;;  %p857_p13 = scmp.lt.u32.totalorder %s855_s10, %s850_s7 }
  0x1a   : > { %p859_p2 = scmp.lt.u32.totalorder %s850_s7, %s1107_s28 }
  0x1b   : > { %p853_p10 = pnand %p852_p9, %p851_p8  ;;  %p858_p0 = por %p857_p13, %p856_p12 }
  0x1d   : > { %p854_p11 = pneg %p853_p10  ;;  %p860_p4 = por %p859_p2, %p858_p0 }
  0x1f   : > { %p861_p5 = pnand %p860_p4, %p854_p11 }
  0x21   : > { %864 = shalt.err (!%p861_p5)
}
  0x22   : > { %s865_s20 = scalar_lea.vmem %s1115_s4, 128  ;;  %s1026_s21 = smov [#allocation6]  }
  0x23   : > { %p866_p6 = scmp.ne.s32.totalorder %s1115_s4, %s865_s20  ;;  %s870_s22 = sshll.u32 %s1026_s21, 4  ;;  %s871_s22 = int_to_ptr.vmem [resolvable:$false] %s870_s22 }
  0x24   : > { %s872_s23 = scalar_lea.vmem %s871_s22, 256  ;;  %p873_p3 = scmp.lt.s32.totalorder %s1115_s4, %s871_s22 }
  0x25   : > { %p868_p8 = pnand %p866_p6, %p852_p9  ;;  %p874_p12 = scmp.lt.s32.totalorder %s872_s23, %s865_s20 }
  0x27   : > { %p869_p10 = pneg %p868_p8  ;;  %p875_p13 = por %p874_p12, %p873_p3 }
  0x29   : > { %p876_p0 = pnand %p875_p13, %p869_p10 }
  0x2b   : > { %879 = shalt.err (!%p876_p0)
}
  0x2c   : > { %785 = dma.hbm_to_vmem [thread:$0]  (!%p1109_p7), %s1107_s28, 128, %s1115_s4, %s1117_s6  }
  0x2d   : > { %s1146_s25 = sadd.s32 4294967295, %s1024_s17   ;;  %s737_s26 = sadd.s32 4294967294, %s1024_s17  }
  0x2e   : > { %p87_p3 = scmp.ne.s32.totalorder %s1008_s13, %s1004_s12  ;;  %p1353_p11 = scmp.eq.s32.totalorder %s1146_s25, 0 }
  0x2f   : > { %p141_p2 = scmp.eq.s32.totalorder %s1146_s25, 1  ;;  %p147_p4 = scmp.eq.s32.totalorder %s737_s26, 1 }
  0x30   : > { %p1155_p5 = por %p1353_p11, %p87_p3  ;;  %p738_p6 = scmp.ge.s32.totalorder %s1024_s17, 1 }
  0x31   : > { %p1163_p8 = por %p141_p2, %p81_p1  ;;  %p1167_p10 = por %p147_p4, %p87_p3 }
  0x32   : > { %s1361_s27 = scalar_select %p1155_p5, 1, 0 }
  0x33   : > { %s1362_s28 = scalar_select %p1163_p8, 1, 0 }
  0x34   : > { %s1363_s30 = scalar_select %p1167_p10, 1, 0 }
  0x35   : > { %p154_p12 = scmp.lt.s32.totalorder %s1024_s17, 3  ;;  %s1027_s7 = smov [#allocation3]  }
  0x36   : > { %s170_s8 = sshll.u32 %s1027_s7, 4  ;;  %s760_s9 = sshll.u32 %s1020_s16, 6  ;;  %s1184_s8 = int_to_ptr.vmem [resolvable:$true] %s170_s8 }
  0x37   : > { %p1172_p13 = pnand %p738_p6, %p154_p12  ;;  %s1182_s19 = scalar_lea.hbm %s1351_s2, %s760_s9 }
  0x38   : > { %s206_s20 = scalar_lea.vmem [#allocation8], %s1113_s5  ;;  %s880_s23 = scalar_lea.hbm %s1182_s19, 64 }
  0x39   : > { %s1364_s4 = scalar_select %p1172_p13, 1, 0 }
  0x3a   : > { %p778_p0 = pneg %p1172_p13  ;;  %s216_s21 = sshll.u32 %s206_s20, 4  ;;  %s217_s21 = int_to_ptr.vmem [resolvable:$true] %s216_s21 }
  0x3b   : > { %p881_p3 = scmp.ne.s32.totalorder %s1182_s19, %s880_s23  ;;  %s885_s9 = scalar_lea.hbm %s1351_s2, 128 }
  0x3c   : > { %p1189_p1 = pnand %p778_p0, %p1353_p11  ;;  %p886_p6 = scmp.lt.u32.totalorder %s1182_s19, %s1351_s2 }
  0x3d   : > { %p883_p2 = pnand %p881_p3, %p852_p9  ;;  %p887_p12 = scmp.lt.u32.totalorder %s885_s9, %s880_s23 }
  0x3e   : > { %s1365_s22 = scalar_select %p1189_p1, 1, 0 }
  0x3f   : > { %p884_p4 = pneg %p883_p2  ;;  %p888_p0 = por %p887_p12, %p886_p6 }
  0x40   : > { %p889_p11 = scmp.lt.u32.totalorder %s880_s23, %s1182_s19 }
  0x42   : > { %p890_p10 = por %p889_p11, %p888_p0 }
  0x44   : > { %p891_p8 = pnand %p890_p10, %p884_p4 }
  0x46   : > { %894 = shalt.err (!%p891_p8)
}
  0x47   : > { %s895_s5 = scalar_lea.vmem %s217_s21, 64  ;;  %s1028_s20 = smov [#allocation8]  }
  0x48   : > { %p896_p5 = scmp.ne.s32.totalorder %s217_s21, %s895_s5  ;;  %s900_s26 = sshll.u32 %s1028_s20, 4  ;;  %s901_s26 = int_to_ptr.vmem [resolvable:$false] %s900_s26 }
  0x49   : > { %s902_s7 = scalar_lea.vmem %s901_s26, 128  ;;  %p903_p13 = scmp.lt.s32.totalorder %s217_s21, %s901_s26 }
  0x4a   : > { %p898_p3 = pnand %p896_p5, %p852_p9  ;;  %p904_p1 = scmp.lt.s32.totalorder %s902_s7, %s895_s5 }
  0x4c   : > { %p899_p2 = pneg %p898_p3  ;;  %p905_p6 = por %p904_p1, %p903_p13 }
  0x4e   : > { %p906_p12 = pnand %p905_p6, %p899_p2 }
  0x50   : > { %909 = shalt.err (!%p906_p12)
}
  0x51   : > { %788 = dma.hbm_to_vmem [thread:$0]  (!%p1109_p7), %s1182_s19, 64, %s217_s21, %s1117_s6  }
  0x52   : > { %s910_s10 = scalar_lea.hbm %s1349_s0, 64  ;;  %p1366_p11 = scmp.ne.s32.totalorder %s1365_s22, 0 }
  0x53   : > { %p911_p9 = scmp.ne.s32.totalorder %s1349_s0, %s910_s10  ;;  %p917_p13 = scmp.lt.u32.totalorder %s910_s10, %s1349_s0 }
  0x54   : > { %p912_p5 = pneg %p1366_p11 }
  0x56   : > { %p913_p8 = pnand %p912_p5, %p911_p9 }
  0x58   : > { %p914_p10 = pneg %p913_p8 }
  0x5a   : > { %p919_p1 = pnand %p917_p13, %p914_p10 }
  0x5c   : > { %922 = shalt.err (!%p919_p1)
}
  0x5d   : > { %s923_s29 = scalar_lea.vmem %s1184_s8, 64  ;;  %p931_p3 = scmp.lt.s32.totalorder %s1184_s8, %s1184_s8 }
  0x5e   : > { %p924_p7 = scmp.ne.s32.totalorder %s1184_s8, %s923_s29  ;;  %p932_p2 = scmp.lt.s32.totalorder %s923_s29, %s923_s29 }
  0x60   : > { %p926_p4 = pnand %p924_p7, %p912_p5  ;;  %p933_p6 = por %p932_p2, %p931_p3 }
  0x62   : > { %p927_p0 = pneg %p926_p4 }
  0x64   : > { %p934_p12 = pnand %p933_p6, %p927_p0 }
  0x66   : > { %937 = shalt.err (!%p934_p12)
}
  0x67   : > { %781 = dma.hbm_to_vmem [thread:$0]  (!%p1366_p11), %s1349_s0, 64, %s1184_s8, [#allocation4]  }
  0x68   : > { %p1367_p9 = scmp.ne.s32.totalorder %s1364_s4, 0 }
  0x69   : > { %p1368_p8 = scmp.eq.s32.totalorder (!%p1367_p9), %s1146_s25, 0 }
  0x6a   : > { %225 = sbr.rel (%p1367_p9) target bundleno = 395 (0x18b), region = 32 }
  0x71   : > { %991 = dma.done.wait (%p1368_p8), [#allocation4], 64   ;;  %p1369_p5 = pmov %p1368_p8 }
  0x72   : > { %s231_s19 = sand.u32 1, %s1146_s25   ;;  %s1242_s21 = sand.u32 1, %s1008_s13  }
  0x73   : > { %993 = vsyncadd (%p1369_p5), [#allocation4], 4294967232  ;;  %s749_s22 = sshll.u32 %s1242_s21, 3  ;;  %s232_s26 = scalar_lea.sflag [#allocation7], %s231_s19 }
  0x74   : > { %s1245_s7 = scalar_lea.vmem [#allocation6], %s749_s22  ;;  %p1370_p11 = scmp.ne.s32.totalorder %s1361_s27, 0 }
  0x76   : > { %995 = dma.done.wait (%p1370_p11), %s232_s26, 192  }
  0x77   : > { %997 = vsyncadd (%p1370_p11), %s232_s26, 4294967104  ;;  %v298_v0 = vlaneseq  ;;  %vm280_vm0 = vcmask 130048   ;;  %s750_s4 = sshll.u32 %s1242_s21, 2  ;;  %v1029_v1 = vmov 1966171168   ;;  %v1030_v4 = vmov 0.0  }
  0x78   : > { %v373_v2 = vunpack.c.l.s4 %v1029_v1  ;;  %281 = vst.msk [vmem:[#allocation2] sm:$0xff] %vm280_vm0, %v1030_v4  ;;  %282 = vst.msk [vmem:[#allocation2 + $0x8] sm:$0xff] %vm280_vm0, %v1030_v4  ;;  %v290_v10 = vld [vmem:[#allocation3] ss:$2 sm:$0x3]  ;;  %s244_s25 = scalar_lea.vmem [#allocation8], %s750_s4 }
  0x79   : > { %v299_v3 = vshrl.u32 %v298_v0, 7  ;;  %283 = vst.msk [vmem:[#allocation2 + $0x10] sm:$0xff] %vm280_vm0, %v1030_v4  ;;  %284 = vst.msk [vmem:[#allocation2 + $0x18] sm:$0xff] %vm280_vm0, %v1030_v4  ;;  %v291_v11 = vld [vmem:[%s244_s25] ss:$2 sm:$0x3] }
  0x7a   : > { %285 = vst.msk [vmem:[#allocation2 + $0x20] sm:$0xff] %vm280_vm0, %v1030_v4  ;;  %286 = vst.msk [vmem:[#allocation2 + $0x28] sm:$0xff] %vm280_vm0, %v1030_v4  ;;  %v374_v5 = vunpack.c.0.s8 %v373_v2  ;;  %v292_v12 = vadd.f32 %v291_v11, %v290_v10  ;;  %v294_v13 = vld [vmem:[#allocation3 + $0x1] ss:$2 sm:$0x3]  ;;  %s751_s27 = sshll.u32 %s1242_s21, 6 }
  0x7b   : > { %287 = vst.msk [vmem:[#allocation2 + $0x30] sm:$0xff] %vm280_vm0, %v1030_v4  ;;  %288 = vst.msk [vmem:[#allocation2 + $0x38] sm:$0xff] %vm280_vm0, %v1030_v4  ;;  %v300_v6 = vadd.s32 8, %v299_v3  ;;  %v1260_v7 = vsub.s32 0, %v299_v3  ;;  %v1262_v8 = vsub.s32 1, %v299_v3  ;;  %v301_v15 = vcvt.s32.f32 %v299_v3  ;;  %s271_s8 = scalar_lea.vmem [#allocation9], %s751_s27 }
  0x7c   : > { %v377_v9 = vsub.s32 %v374_v5, %v299_v3  ;;  %v752_v14 = vld [vmem:[%s244_s25 + $0x1] ss:$2 sm:$0x3]  ;;  %v753_v18 = vld.sshfl [vmem:[%s1245_s7] sm:$0xff pattern:$0x75316420] }
  0x7d   : > { %v302_v16 = vcvt.s32.f32 %v300_v6  ;;  %v297_v17 = vadd.f32 %v752_v14, %v294_v13  ;;  %v317_v19 = vrot.slane %v292_v12, %v1262_v8  ;;  %v313_v20 = vrot.slane %v292_v12, %v1260_v7  ;;  %s761_s23 = sshll.u32 %s1016_s15, 10  ;;  %s609_s9 = sshll.u32 %s271_s8, 4  ;;  %s1298_s9 = int_to_ptr.vmem [resolvable:$true] %s609_s9 }
  0x7e   : > { %v378_v21 = vrot.slane %v753_v18, %v377_v9  ;;  %v371_v34 = vcombine.high %v753_v18, %v753_v18  ;;  %s1296_s5 = scalar_lea.hbm %s1352_s3, %s761_s23  ;;  %s594_s15 = scalar_lea.sflag [#allocation5], %s1242_s21 }
  0x7f   : > { %v340_v22 = vrot.slane %v297_v17, %v1260_v7  ;;  %v344_v23 = vrot.slane %v297_v17, %v1262_v8  ;;  %v321_v24 = vsub.f32 %v317_v19, %v301_v15  ;;  %v323_v25 = vsub.f32 %v317_v19, %v302_v16  ;;  %s938_s20 = scalar_lea.vmem %s1298_s9, 1024  ;;  %p1371_p13 = scmp.ne.s32.totalorder %s1362_s28, 0 }
  0x80   : > { %v320_v26 = vsub.f32 %v313_v20, %v301_v15  ;;  %v322_v27 = vsub.f32 %v313_v20, %v302_v16  ;;  %v386_v29 = vcombine.high %v378_v21, %v378_v21  ;;  %v395_v37 = vrot.slane %v378_v21, %v1262_v8  ;;  %p939_p10 = scmp.ne.s32.totalorder %s1298_s9, %s938_s20  ;;  %s1031_s29 = smov [#allocation9]  }
  0x81   : > { %v348_v28 = vsub.f32 %v344_v23, %v301_v15  ;;  %v347_v30 = vsub.f32 %v340_v22, %v301_v15  ;;  %v325_v31 = vand.u32 2147483647, %v321_v24  ;;  %v327_v32 = vand.u32 2147483647, %v323_v25  ;;  %s942_s1 = sshll.u32 %s1031_s29, 4  ;;  %s943_s1 = int_to_ptr.vmem [resolvable:$false] %s942_s1 }
  0x82   : > { %v324_v33 = vand.u32 2147483647, %v320_v26  ;;  %v326_v35 = vand.u32 2147483647, %v322_v27  ;;  %v411_v42 = vrot.slane %v386_v29, %v1262_v8  ;;  %v350_v46 = vsub.f32 %v344_v23, %v302_v16  ;;  %v553_v23 = vld [vmem:[#allocation2 + $0x20] sm:$0xff]  ;;  %p940_p1 = pnand %p939_p10, %p1371_p13  ;;  %s944_s6 = scalar_lea.vmem %s943_s1, 2048 }
  0x83   : > { %v352_v36 = vand.u32 2147483647, %v348_v28  ;;  %v351_v38 = vand.u32 2147483647, %v347_v30  ;;  %v329_v39 = vsub.f32 1.0, %v325_v31  ;;  %v331_v40 = vsub.f32 1.0, %v327_v32  ;;  %p945_p4 = scmp.lt.s32.totalorder %s1298_s9, %s943_s1  ;;  %p946_p0 = scmp.lt.s32.totalorder %s944_s6, %s938_s20 }
  0x84   : > { %v328_v41 = vsub.f32 1.0, %v324_v33  ;;  %v330_v43 = vsub.f32 1.0, %v326_v35  ;;  %v349_v50 = vsub.f32 %v340_v22, %v302_v16  ;;  %v354_v53 = vand.u32 2147483647, %v350_v46  ;;  %v550_v30 = vld [vmem:[#allocation2 + $0x8] sm:$0xff]  ;;  %v552_v46 = vld [vmem:[#allocation2 + $0x18] sm:$0xff]  ;;  %p941_p7 = pneg %p940_p1 }
  0x85   : > { %v356_v44 = vsub.f32 1.0, %v352_v36  ;;  %v355_v45 = vsub.f32 1.0, %v351_v38  ;;  %v333_v47 = vmax.f32 %v329_v39, 0.0  ;;  %v335_v48 = vmax.f32 %v331_v40, 0.0  ;;  %v554_v31 = vld [vmem:[#allocation2 + $0x28] sm:$0xff]  ;;  %v551_v38 = vld [vmem:[#allocation2 + $0x10] sm:$0xff]  ;;  %p947_p3 = por %p946_p0, %p945_p4 }
  0x86   : > { %v332_v49 = vmax.f32 %v328_v41, 0.0  ;;  %v334_v51 = vmax.f32 %v330_v43, 0.0  ;;  %v353_v55 = vand.u32 2147483647, %v349_v50  ;;  %v385_v56 = vrot.slane %v371_v34, %v377_v9  ;;  %v555_v39 = vld [vmem:[#allocation2 + $0x30] sm:$0xff] }
  0x87   : > { %v360_v52 = vmax.f32 %v356_v44, 0.0  ;;  %v762_v54 = vpack.c.bf16 %v335_v48, %v333_v47  ;;  %v391_v60 = vrot.slane %v378_v21, %v1260_v7  ;;  %v359_v61 = vmax.f32 %v355_v45, 0.0  ;;  %p948_p2 = pnand %p947_p3, %p941_p7 }
  0x88   : > { %v764_v57 = vpack.c.bf16 %v334_v51, %v332_v49  ;;  %v407_v62 = vrot.slane %v386_v29, %v1260_v7  ;;  %v358_v63 = vsub.f32 1.0, %v354_v53  ;;  %v357_v0 = vsub.f32 1.0, %v353_v55  ;;  %v556_v49 = vld [vmem:[#allocation2 + $0x38] sm:$0xff] }
  0x89   : > { %v429_v58 = vmul.f32 %v395_v37, %v360_v52  ;;  %v437_v59 = vmul.f32 %v411_v42, %v360_v52  ;;  %763 = vmatprep.subr.bf16.mxu0 %v762_v54  ;;  %766 = vmatprep.subr.bf16.mxu1 %v762_v54  ;;  %v387_v1 = vcombine.high %v385_v56, %v385_v56 }
  0x8a   : > { %765 = vmatpush1.bf16.xpose.msra.mxu0 %v764_v57  ;;  %767 = vmatpush1.bf16.xpose.msra.mxu1 %v764_v57  ;;  %v362_v2 = vmax.f32 %v358_v63, 0.0  ;;  %v428_v3 = vmul.f32 %v391_v60, %v359_v61  ;;  %v436_v4 = vmul.f32 %v407_v62, %v359_v61  ;;  %v361_v5 = vmax.f32 %v357_v0, 0.0 }
  0x8b   : > { %508 = vmatprep.mubr.f32.mxu0 %v429_v58  ;;  %528 = vmatprep.mubr.f32.mxu1 %v437_v59  ;;  %v403_v10 = vrot.slane %v385_v56, %v1262_v8  ;;  %v419_v11 = vrot.slane %v387_v1, %v1262_v8  ;;  %v399_v12 = vrot.slane %v385_v56, %v1260_v7 }
  0x8c   : > { %v431_v6 = vmul.f32 %v395_v37, %v362_v2  ;;  %v439_v9 = vmul.f32 %v411_v42, %v362_v2  ;;  %v430_v13 = vmul.f32 %v391_v60, %v361_v5  ;;  %v438_v14 = vmul.f32 %v407_v62, %v361_v5 }
  0x8d   : > { %v415_v15 = vrot.slane %v387_v1, %v1260_v7  ;;  %v433_v16 = vmul.f32 %v403_v10, %v360_v52  ;;  %v441_v17 = vmul.f32 %v419_v11, %v360_v52  ;;  %v432_v18 = vmul.f32 %v399_v12, %v359_v61  ;;  %v549_v7 = vld [vmem:[#allocation2] sm:$0xff] }
  0x8e   : > { %v435_v20 = vmul.f32 %v403_v10, %v362_v2  ;;  %v443_v8 = vmul.f32 %v419_v11, %v362_v2  ;;  %v434_v21 = vmul.f32 %v399_v12, %v361_v5 }
  0x8f   : > { %v440_v19 = vmul.f32 %v415_v15, %v359_v61  ;;  %v442_v22 = vmul.f32 %v415_v15, %v361_v5 }
  0x91   : > { %509 = vmatmul.mubr.f32.vlgmr.msra.gmra.mrb[0].mxu0 %v428_v3  ;;  %529 = vmatmul.mubr.f32.vlgmr.msra.gmra.mrb[0].mxu1 %v436_v4 }
  0x92   : > { %513 = vmatprep.mubr.f32.mxu0 %v431_v6  ;;  %533 = vmatprep.mubr.f32.mxu1 %v439_v9 }
  0x95   : > { %514 = vmatmul.mubr.f32.gmra.mrb[2].mxu0 %v430_v13  ;;  %534 = vmatmul.mubr.f32.gmra.mrb[2].mxu1 %v438_v14 }
  0x96   : > { %518 = vmatprep.mubr.f32.mxu0 %v433_v16  ;;  %538 = vmatprep.mubr.f32.mxu1 %v441_v17 }
  0x99   : > { %519 = vmatmul.mubr.f32.gmra.mrb[4].mxu0 %v432_v18  ;;  %539 = vmatmul.mubr.f32.gmra.mrb[4].mxu1 %v440_v19 }
  0x9a   : > { %523 = vmatprep.mubr.f32.mxu0 %v435_v20  ;;  %543 = vmatprep.mubr.f32.mxu1 %v443_v8 }
  0x9d   : > { %524 = vmatmul.mubr.f32.gmra.mrb[6].mxu0 %v434_v21  ;;  %544 = vmatmul.mubr.f32.gmra.mrb[6].mxu1 %v442_v22 }
 0x164   : > { %v510_v24 = vpop.f32.mrb[0].mxu0  ;;  %v530_v25 = vpop.f32.mrb[0].mxu1 }
 0x165   : > { %v557_v26 = vadd.f32 %v549_v7, %v510_v24  ;;  %v561_v27 = vadd.f32 %v553_v23, %v530_v25  ;;  %v512_v28 = vpop.f32.mrb[1].mxu0  ;;  %v532_v29 = vpop.f32.mrb[1].mxu1 }
 0x167   : > { %566 = vst.msk [vmem:[#allocation2] sm:$0xff] %vm280_vm0, %v557_v26  ;;  %570 = vst.msk [vmem:[#allocation2 + $0x20] sm:$0xff] %vm280_vm0, %v561_v27 }
 0x168   : > { %v515_v32 = vpop.f32.mrb[2].mxu0  ;;  %v535_v33 = vpop.f32.mrb[2].mxu1 }
 0x169   : > { %v558_v34 = vadd.f32 %v550_v30, %v515_v32  ;;  %v562_v35 = vadd.f32 %v554_v31, %v535_v33  ;;  %v517_v36 = vpop.f32.mrb[3].mxu0  ;;  %v537_v37 = vpop.f32.mrb[3].mxu1 }
 0x16b   : > { %567 = vst.msk [vmem:[#allocation2 + $0x8] sm:$0xff] %vm280_vm0, %v558_v34  ;;  %571 = vst.msk [vmem:[#allocation2 + $0x28] sm:$0xff] %vm280_vm0, %v562_v35 }
 0x16c   : > { %v520_v40 = vpop.f32.mrb[4].mxu0  ;;  %v540_v41 = vpop.f32.mrb[4].mxu1 }
 0x16d   : > { %v559_v42 = vadd.f32 %v551_v38, %v520_v40  ;;  %v563_v43 = vadd.f32 %v555_v39, %v540_v41  ;;  %v522_v44 = vpop.f32.mrb[5].mxu0  ;;  %v542_v45 = vpop.f32.mrb[5].mxu1 }
 0x16e   : > { %v577_v47 = vld [vmem:[#allocation2] sm:$0xff] }
 0x16f   : > { %v581_v48 = vld [vmem:[#allocation2 + $0x20] sm:$0xff]  ;;  %585 = vst.msk [vmem:[%s271_s8] sm:$0xff] %vm280_vm0, %v577_v47  ;;  %568 = vst.msk [vmem:[#allocation2 + $0x10] sm:$0xff] %vm280_vm0, %v559_v42 }
 0x170   : > { %589 = vst.msk [vmem:[%s271_s8 + $0x20] sm:$0xff] %vm280_vm0, %v581_v48  ;;  %572 = vst.msk [vmem:[#allocation2 + $0x30] sm:$0xff] %vm280_vm0, %v563_v43  ;;  %v525_v50 = vpop.f32.mrb[6].mxu0  ;;  %v545_v51 = vpop.f32.mrb[6].mxu1 }
 0x171   : > { %v560_v52 = vadd.f32 %v552_v46, %v525_v50  ;;  %v564_v53 = vadd.f32 %v556_v49, %v545_v51  ;;  %v527_v54 = vpop.f32.mrb[7].mxu0  ;;  %v547_v55 = vpop.f32.mrb[7].mxu1 }
 0x172   : > { %v578_v56 = vld [vmem:[#allocation2 + $0x8] sm:$0xff] }
 0x173   : > { %v582_v57 = vld [vmem:[#allocation2 + $0x28] sm:$0xff]  ;;  %586 = vst.msk [vmem:[%s271_s8 + $0x8] sm:$0xff] %vm280_vm0, %v578_v56  ;;  %569 = vst.msk [vmem:[#allocation2 + $0x18] sm:$0xff] %vm280_vm0, %v560_v52 }
 0x174   : > { %590 = vst.msk [vmem:[%s271_s8 + $0x28] sm:$0xff] %vm280_vm0, %v582_v57  ;;  %573 = vst.msk [vmem:[#allocation2 + $0x38] sm:$0xff] %vm280_vm0, %v564_v53 }
 0x176   : > { %v579_v58 = vld [vmem:[#allocation2 + $0x10] sm:$0xff] }
 0x177   : > { %v583_v59 = vld [vmem:[#allocation2 + $0x30] sm:$0xff]  ;;  %587 = vst.msk [vmem:[%s271_s8 + $0x10] sm:$0xff] %vm280_vm0, %v579_v58 }
 0x178   : > { %591 = vst.msk [vmem:[%s271_s8 + $0x30] sm:$0xff] %vm280_vm0, %v583_v59 }
 0x17a   : > { %v580_v60 = vld [vmem:[#allocation2 + $0x18] sm:$0xff] }
 0x17b   : > { %v584_v61 = vld [vmem:[#allocation2 + $0x38] sm:$0xff]  ;;  %588 = vst.msk [vmem:[%s271_s8 + $0x18] sm:$0xff] %vm280_vm0, %v580_v60 }
 0x17c   : > { %592 = vst.msk [vmem:[%s271_s8 + $0x38] sm:$0xff] %vm280_vm0, %v584_v61 }
 0x17d   : > { %951 = shalt.err (!%p948_p2)
}
 0x17e   : > { %s952_s19 = scalar_lea.hbm %s1296_s5, 1024  ;;  %s956_s7 = scalar_lea.hbm %s1352_s3, 2048 }
 0x17f   : > { %p953_p6 = scmp.ne.s32.totalorder %s1296_s5, %s952_s19  ;;  %p957_p8 = scmp.lt.u32.totalorder %s1296_s5, %s1352_s3 }
 0x180   : > { %p958_p5 = scmp.lt.u32.totalorder %s956_s7, %s952_s19  ;;  %p960_p10 = scmp.lt.u32.totalorder %s952_s19, %s1296_s5 }
 0x181   : > { %p954_p12 = pnand %p953_p6, %p1371_p13 }
 0x182   : > { %p959_p11 = por %p958_p5, %p957_p8 }
 0x183   : > { %p955_p9 = pneg %p954_p12 }
 0x184   : > { %p961_p1 = por %p960_p10, %p959_p11 }
 0x186   : > { %p962_p7 = pnand %p961_p1, %p955_p9 }
 0x188   : > { %965 = shalt.err (!%p962_p7)
}
 0x189   : > { %s1032_s27 = smov 128   ;;  %s1033_s8 = smov 8  }
 0x18a   : > { %776 = dma.vmem_to_hbm [thread:$0]  (%p1371_p13), %s1298_s9, 1024, %s1296_s5, %s594_s15, %s1032_s27, %s1032_s27, %s1033_s8  }
 0x18b PF: > { %s624_s23 = sand.u32 1, %s1004_s12   ;;  %p1372_p4 = scmp.ne.s32.totalorder %s1363_s30, 0 }
 0x18c   : > { %p1373_p0 = scmp.ge.s32.totalorder %s1024_s17, 2  ;;  %s625_s10 = scalar_lea.sflag [#allocation5], %s624_s23 }
 0x18e   : > { %p790_p3 = pnand %p1373_p0, %p1372_p4 }
 0x190   : > { %999 = dma.done.wait (!%p790_p3), %s625_s10, 1024  }
 0x191   : > { %1001 = vsyncadd (!%p790_p3), %s625_s10, 4294966272  ;;  %s20_s17 = sadd.s32 1, %s1024_s17   ;;  %s1374_s12 = smov %s1008_s13 }
 0x192   : > { %p17_p2 = scmp.ge.s32.totalorder %s20_s17, 4   ;;  %s1375_s13 = smov %s1012_s14 }
 0x193   : > { %s1376_s14 = smov %s1102_s24  ;;  %s1377_s15 = smov %s1020_s16 }
 0x194   : > { %s1378_s16 = smov %s1380_s18  ;;  %19 = sbr.rel (!%p17_p2) target bundleno = 9 (0x9), region = 104 }
 0x19b   :  { %630 = vsyncpa [#allocation4], 1 }
 0x19c   :  { %632 = vsyncpa [#allocation4 + $0x1], 1 }
 0x19d   :  { %633 = vsyncpa [#allocation7], 1 }
 0x19e   :  { %635 = vsyncpa [#allocation7 + $0x1], 1 }
 0x19f   :  { %636 = vsyncpa [#allocation5], 1 }
 0x1a0   :  { %638 = vsyncpa [#allocation5 + $0x1], 1 }

</bundles_post_ra>
